<compile_context>
chip_gen: v7x
topology: tpu7x:2x2x1
jax: 0.10.0
libtpu: 0.0.40
codegen_flags: <defaults>
</compile_context>

<pallas_src>
import jax
import jax.numpy as jnp
from jax.experimental import pallas as pl
from jax.experimental.pallas import tpu as pltpu


# ----------------------------- configuration -------------------------------
DNN_CONFIGURATION = {
    "embedding_table_size": 50,
    "embedding_dim": 8,
    "mlp_layer_sizes": [64, 32],
}
COLUMN_NUM = 4                      # number of embedding tables / columns
BATCH = 8                           # demo batch size
# number of sequence features per column; total must equal COLUMN_NUM + 3
SEQ_FEATURES_PER_COLUMN = [4, 1, 1, 1]
assert sum(SEQ_FEATURES_PER_COLUMN) == COLUMN_NUM + 3

EMB_SIZE = DNN_CONFIGURATION["embedding_table_size"]
EMB_DIM = DNN_CONFIGURATION["embedding_dim"]
H1, H2 = DNN_CONFIGURATION["mlp_layer_sizes"]
NUM_SLOTS = COLUMN_NUM + 3          # concat pooling -> 7 lookups
NUM_SLOTS_PAD = 8                   # sublane-aligned index rows
D_IN = NUM_SLOTS * EMB_DIM          # MLP input size of the torch module

# Folded-weight layout: each slot owns a SLOT_PITCH-row block (>= EMB_SIZE,
# 8-aligned) of the folded matrix.
SLOT_PITCH = 64
K_PAD = NUM_SLOTS * SLOT_PITCH      # 448

# Which embedding table each concat slot reads, e.g. [0, 0, 0, 0, 1, 2, 3].
COL_OF_SLOT = []
for _c, _n in enumerate(SEQ_FEATURES_PER_COLUMN):
    COL_OF_SLOT.extend([_c] * _n)

TB_MAX = 512                        # max batch-lane tile (multiple of 128)


def _round_up(a, m):
    return (a + m - 1) // m * m


# ------------------------------ Pallas kernel -------------------------------
def _deep_emb_mlp_kernel(idx_ref, weff_ref, w2t_ref, pk_ref, o_ref):
    """Fused embedding-gather + 3-layer MLP, batch on the lane axis.

    idx_ref  : [8, TB]      int32 indices; row s = concat slot s (row 7 = pad)
    weff_ref : [H1, K_PAD]  tables folded into W1, transposed (compute dtype)
    w2t_ref  : [H2, H1]     W2 transposed (compute dtype)
    pk_ref   : [H1, 8]      f32 pack: col0 = b1, col1[:H2] = b2,
                            col2[:H2] = w3, [0, 3] = b3
    o_ref    : [8, TB]      f32; every sublane holds the per-batch output scalar
    """
    f32 = jnp.float32
    cdt = weff_ref.dtype

    idx = idx_ref[...]                                       # [8, TB] int32
    tb = idx.shape[1]

    pk = pk_ref[...]                                         # [H1, 8] f32
    b1 = pk[:, 0:1]                                          # [H1, 1]
    b2 = pk[:H2, 1:2]                                        # [H2, 1]
    w3 = pk[:H2, 2:3]                                        # [H2, 1]
    b3 = pk[0:1, 3:4]                                        # [1, 1]

    # One-hot selector [K_PAD, TB]; slot s occupies rows [s*64, s*64+EMB_SIZE).
    # One compare per slot, no cross-slot accumulation (disjoint row blocks).
    iota = jax.lax.broadcasted_iota(jnp.int32, (SLOT_PITCH, tb), 0)
    onehot = jnp.concatenate(
        [(iota == idx[s:s + 1, :]).astype(cdt) for s in range(NUM_SLOTS)],
        axis=0)                                              # [K_PAD, TB]

    # Layer 1 (embedding gather + Linear fused into one MXU matmul) + ReLU.
    h1 = jnp.dot(weff_ref[...], onehot,
                 preferred_element_type=f32)                 # [H1, TB]
    h1 = jnp.maximum(h1 + b1, 0.0)

    # Layer 2 + ReLU.
    h2 = jnp.dot(w2t_ref[...], h1.astype(cdt),
                 preferred_element_type=f32) + b2            # [H2, TB]
    h2 = jnp.maximum(h2, 0.0)

    # Layer 3 (H2 -> 1): VPU multiply + sublane reduction (no M=1 MXU matmul).
    out = jnp.sum(h2 * w3, axis=0, keepdims=True) + b3       # [1, TB]

    # Lane-dense store (lane = batch index), broadcast over the 8 sublanes.
    o_ref[...] = jnp.broadcast_to(out, o_ref.shape).astype(o_ref.dtype)


def deep_emb_mlp_pallas(idx_t, weff_t, w2_t, pk):
    """idx_t: [NUM_SLOTS_PAD, B] int32 -> [B] float32."""
    B = idx_t.shape[1]

    # Batch-lane tile: multiple of 128.  Prefer >= 2 grid steps (v7x megacore
    # shards "parallel" grid axes across its 2 TensorCores); otherwise as fat
    # as possible up to TB_MAX to amortize per-step overhead on v5e/v6e.
    b128 = _round_up(B, 128)
    if 256 <= b128 <= TB_MAX:
        tb = _round_up(b128 // 2, 128)
    else:
        tb = min(b128, TB_MAX)
    b_pad = _round_up(B, tb)
    if b_pad != B:
        idx_t = jnp.pad(idx_t, ((0, 0), (0, b_pad - B)))     # pad lanes w/ idx 0

    out = pl.pallas_call(
        _deep_emb_mlp_kernel,
        out_shape=jax.ShapeDtypeStruct((8, b_pad), jnp.float32),
        grid=(b_pad // tb,),
        in_specs=[
            # lane-dense, batch-tiled indices
            pl.BlockSpec((NUM_SLOTS_PAD, tb), lambda i: (0, i)),
            # VMEM-resident parameters (constant index_map -> no per-step DMA)
            pl.BlockSpec((H1, K_PAD), lambda i: (0, 0)),
            pl.BlockSpec((H2, H1), lambda i: (0, 0)),
            pl.BlockSpec((H1, 8), lambda i: (0, 0)),
        ],
        out_specs=pl.BlockSpec((8, tb), lambda i: (0, i)),
        compiler_params=pltpu.CompilerParams(
            dimension_semantics=("parallel",)),   # shard batch tiles over TCs
    )(idx_t, weff_t, w2_t, pk)
    return out[0, :B]                                        # [B]


# --------------------------- parameter construction -------------------------
def init_params(key):
    keys = jax.random.split(key, COLUMN_NUM + 3)

    # Embedding tables: trunc_normal_ equivalent (truncated standard normal).
    tables = [
        jax.random.truncated_normal(keys[i], -2.0, 2.0, (EMB_SIZE, EMB_DIM),
                                    dtype=jnp.float32)
        for i in range(COLUMN_NUM)
    ]

    def linear(k, fan_in, fan_out):
        # torch.nn.Linear default: U(-1/sqrt(fan_in), 1/sqrt(fan_in))
        kw, kb = jax.random.split(k)
        bound = 1.0 / jnp.sqrt(jnp.float32(fan_in))
        w = jax.random.uniform(kw, (fan_in, fan_out), jnp.float32, -bound, bound)
        b = jax.random.uniform(kb, (fan_out,), jnp.float32, -bound, bound)
        return w, b

    w1, b1 = linear(keys[COLUMN_NUM + 0], D_IN, H1)
    w2, b2 = linear(keys[COLUMN_NUM + 1], H1, H2)
    w3, b3 = linear(keys[COLUMN_NUM + 2], H2, 1)
    dense = (w1, b1, w2, b2, w3, b3)
    return tables, dense


def pack_kernel_params(tables, dense, compute_dtype):
    """One-time offline packing: fold tables into W1, transpose, pack biases.

    compute_dtype: jnp.bfloat16 recommended on v6e/v7x (f32 accumulation is
    kept in-kernel via preferred_element_type); jnp.float32 for bit-faithful
    numerics vs. the PyTorch module.
    """
    w1, b1, w2, b2, w3, b3 = dense

    # W_eff[s*SLOT_PITCH + e, :] = tables[col(s)][e, :] @ W1[s*D:(s+1)*D, :]
    weff = jnp.zeros((K_PAD, H1), jnp.float32)
    for s in range(NUM_SLOTS):
        blk = jnp.dot(tables[COL_OF_SLOT[s]],
                      w1[s * EMB_DIM:(s + 1) * EMB_DIM, :],
                      precision="highest")                   # [EMB_SIZE, H1]
        weff = weff.at[s * SLOT_PITCH: s * SLOT_PITCH + EMB_SIZE, :].set(blk)

    weff_t = weff.T.astype(compute_dtype)                    # [H1, K_PAD]
    w2_t = w2.T.astype(compute_dtype)                        # [H2, H1]

    pk = jnp.zeros((H1, 8), jnp.float32)
    pk = pk.at[:, 0].set(b1)
    pk = pk.at[:H2, 1].set(b2)
    pk = pk.at[:H2, 2].set(w3[:, 0])
    pk = pk.at[0, 3].set(b3[0])
    return (weff_t, w2_t, pk)


# ------------------------------ forward pass --------------------------------
def deep_emb_mlp_forward(x, kernel_params):
    """x: list (len COLUMN_NUM) of lists of int32 index arrays, each [B]."""
    rows = []
    for seq_fea in x:
        for fea in seq_fea:
            rows.append(fea.astype(jnp.int32))
    idx_t = jnp.stack(rows, axis=0)                          # [NUM_SLOTS, B]
    idx_t = jnp.pad(idx_t, ((0, NUM_SLOTS_PAD - NUM_SLOTS), (0, 0)))
    return deep_emb_mlp_pallas(idx_t, *kernel_params)        # [B] == p.squeeze()


def reference_forward(x, tables, dense):
    """Pure-JAX reference for correctness check."""
    w1, b1, w2, b2, w3, b3 = dense
    input_layer = []
    for i, seq_fea in enumerate(x):
        for fea in seq_fea:
            input_layer.append(jnp.take(tables[i], fea, axis=0))
    xc = jnp.concatenate(input_layer, axis=-1)
    h = jnp.maximum(jnp.dot(xc, w1, precision="highest") + b1, 0.0)
    h = jnp.maximum(jnp.dot(h, w2, precision="highest") + b2, 0.0)
    return jnp.squeeze(jnp.dot(h, w3, precision="highest") + b3)


# ---------------------------------- main -------------------------------------
if __name__ == "__main__":
    key = jax.random.PRNGKey(0)
    param_key, data_key = jax.random.split(key)

    tables, dense = init_params(param_key)

    # Build the nested-list input structure: COLUMN_NUM columns, each with
    # SEQ_FEATURES_PER_COLUMN[i] index tensors of shape [BATCH].
    x = []
    dkeys = jax.random.split(data_key, sum(SEQ_FEATURES_PER_COLUMN))
    k_idx = 0
    for i in range(COLUMN_NUM):
        col = []
        for _ in range(SEQ_FEATURES_PER_COLUMN[i]):
            col.append(jax.random.randint(dkeys[k_idx], (BATCH,), 0, EMB_SIZE,
                                          dtype=jnp.int32))
            k_idx += 1
        x.append(col)

    ref = jax.block_until_ready(reference_forward(x, tables, dense))

    # f32 compute path: bit-faithful to the module numerics.
    params_f32 = pack_kernel_params(tables, dense, jnp.float32)
    out_f32 = jax.block_until_ready(deep_emb_mlp_forward(x, params_f32))
    assert out_f32.shape == (BATCH,), out_f32.shape
    assert jnp.allclose(out_f32, ref, atol=1e-4, rtol=1e-4), (out_f32, ref)

    # bf16 matmul-operand path (recommended on v6e/v7x; f32 accumulation).
    params_bf16 = pack_kernel_params(tables, dense, jnp.bfloat16)
    out_bf16 = jax.block_until_ready(deep_emb_mlp_forward(x, params_bf16))
    assert out_bf16.shape == (BATCH,), out_bf16.shape
    assert jnp.allclose(out_bf16, ref, atol=5e-2, rtol=5e-2), (out_bf16, ref)

    print("KERNEL_OK")
</pallas_src>

<mosaic_0001>
module attributes {stable_mosaic.version = 11 : i64} {
  func.func @_deep_emb_mlp_kernel(%arg0: i32, %arg1: memref<8x128xi32, #tpu.memory_space<vmem>>, %arg2: memref<64x448xf32, #tpu.memory_space<vmem>>, %arg3: memref<32x64xf32, #tpu.memory_space<vmem>>, %arg4: memref<64x8xf32, #tpu.memory_space<vmem>>, %arg5: memref<8x128xf32, #tpu.memory_space<vmem>>) attributes {dimension_semantics = [#tpu.dimension_semantics<parallel>], iteration_bounds = array<i64: 1>, scalar_prefetch = 0 : i64, scratch_operands = 0 : i64, tpu.core_type = #tpu.core_type<tc>, window_params = [{transform_indices = @transform_0, window_bounds = array<i64: 8, 128>}, {pipeline_mode = #tpu.pipeline_mode<synchronous>, transform_indices = @transform_1, window_bounds = array<i64: 64, 448>}, {pipeline_mode = #tpu.pipeline_mode<synchronous>, transform_indices = @transform_2, window_bounds = array<i64: 32, 64>}, {pipeline_mode = #tpu.pipeline_mode<synchronous>, transform_indices = @transform_3, window_bounds = array<i64: 64, 8>}, {transform_indices = @transform_4, window_bounds = array<i64: 8, 128>}]} {
    %c0 = arith.constant 0 : index
    %c0_0 = arith.constant 0 : index
    %0 = vector.load %arg1[%c0, %c0_0] : memref<8x128xi32, #tpu.memory_space<vmem>>, vector<8x128xi32>
    %c0_1 = arith.constant 0 : index
    %c0_2 = arith.constant 0 : index
    %1 = vector.load %arg4[%c0_1, %c0_2] : memref<64x8xf32, #tpu.memory_space<vmem>>, vector<64x8xf32>
    %2 = vector.extract_strided_slice %1 {offsets = [0, 0], sizes = [64, 1], strides = [1, 1]} : vector<64x8xf32> to vector<64x1xf32>
    %3 = vector.extract_strided_slice %1 {offsets = [0, 1], sizes = [32, 1], strides = [1, 1]} : vector<64x8xf32> to vector<32x1xf32>
    %4 = vector.extract_strided_slice %1 {offsets = [0, 2], sizes = [32, 1], strides = [1, 1]} : vector<64x8xf32> to vector<32x1xf32>
    %5 = vector.extract_strided_slice %1 {offsets = [0, 3], sizes = [1, 1], strides = [1, 1]} : vector<64x8xf32> to vector<1x1xf32>
    %6 = tpu.iota {dimensions = array<i32: 0>} : vector<64x128xi32>
    %7 = vector.extract_strided_slice %0 {offsets = [0, 0], sizes = [1, 128], strides = [1, 1]} : vector<8x128xi32> to vector<1x128xi32>
    %8 = vector.broadcast %7 : vector<1x128xi32> to vector<64x128xi32>
    %9 = arith.cmpi eq, %6, %8 : vector<64x128xi32>
    %10 = arith.extui %9 : vector<64x128xi1> to vector<64x128xi32>
    %11 = arith.sitofp %10 : vector<64x128xi32> to vector<64x128xf32>
    %12 = vector.extract_strided_slice %0 {offsets = [1, 0], sizes = [1, 128], strides = [1, 1]} : vector<8x128xi32> to vector<1x128xi32>
    %13 = vector.broadcast %12 : vector<1x128xi32> to vector<64x128xi32>
    %14 = arith.cmpi eq, %6, %13 : vector<64x128xi32>
    %15 = arith.extui %14 : vector<64x128xi1> to vector<64x128xi32>
    %16 = arith.sitofp %15 : vector<64x128xi32> to vector<64x128xf32>
    %17 = vector.extract_strided_slice %0 {offsets = [2, 0], sizes = [1, 128], strides = [1, 1]} : vector<8x128xi32> to vector<1x128xi32>
    %18 = vector.broadcast %17 : vector<1x128xi32> to vector<64x128xi32>
    %19 = arith.cmpi eq, %6, %18 : vector<64x128xi32>
    %20 = arith.extui %19 : vector<64x128xi1> to vector<64x128xi32>
    %21 = arith.sitofp %20 : vector<64x128xi32> to vector<64x128xf32>
    %22 = vector.extract_strided_slice %0 {offsets = [3, 0], sizes = [1, 128], strides = [1, 1]} : vector<8x128xi32> to vector<1x128xi32>
    %23 = vector.broadcast %22 : vector<1x128xi32> to vector<64x128xi32>
    %24 = arith.cmpi eq, %6, %23 : vector<64x128xi32>
    %25 = arith.extui %24 : vector<64x128xi1> to vector<64x128xi32>
    %26 = arith.sitofp %25 : vector<64x128xi32> to vector<64x128xf32>
    %27 = vector.extract_strided_slice %0 {offsets = [4, 0], sizes = [1, 128], strides = [1, 1]} : vector<8x128xi32> to vector<1x128xi32>
    %28 = vector.broadcast %27 : vector<1x128xi32> to vector<64x128xi32>
    %29 = arith.cmpi eq, %6, %28 : vector<64x128xi32>
    %30 = arith.extui %29 : vector<64x128xi1> to vector<64x128xi32>
    %31 = arith.sitofp %30 : vector<64x128xi32> to vector<64x128xf32>
    %32 = vector.extract_strided_slice %0 {offsets = [5, 0], sizes = [1, 128], strides = [1, 1]} : vector<8x128xi32> to vector<1x128xi32>
    %33 = vector.broadcast %32 : vector<1x128xi32> to vector<64x128xi32>
    %34 = arith.cmpi eq, %6, %33 : vector<64x128xi32>
    %35 = arith.extui %34 : vector<64x128xi1> to vector<64x128xi32>
    %36 = arith.sitofp %35 : vector<64x128xi32> to vector<64x128xf32>
    %37 = vector.extract_strided_slice %0 {offsets = [6, 0], sizes = [1, 128], strides = [1, 1]} : vector<8x128xi32> to vector<1x128xi32>
    %38 = vector.broadcast %37 : vector<1x128xi32> to vector<64x128xi32>
    %39 = arith.cmpi eq, %6, %38 : vector<64x128xi32>
    %40 = arith.extui %39 : vector<64x128xi1> to vector<64x128xi32>
    %41 = arith.sitofp %40 : vector<64x128xi32> to vector<64x128xf32>
    %42 = tpu.concatenate %11, %16, %21, %26, %31, %36, %41 in 0 : vector<64x128xf32>, vector<64x128xf32>, vector<64x128xf32>, vector<64x128xf32>, vector<64x128xf32>, vector<64x128xf32>, vector<64x128xf32> -> vector<448x128xf32>
    %c0_3 = arith.constant 0 : index
    %c0_4 = arith.constant 0 : index
    %43 = vector.load %arg2[%c0_3, %c0_4] : memref<64x448xf32, #tpu.memory_space<vmem>>, vector<64x448xf32>
    %cst = arith.constant dense<0.000000e+00> : vector<64x128xf32>
    %44 = tpu.matmul %43, %42, %cst {dimension_numbers = #tpu.dot_dimension_numbers<[1], [0], [0], [1], [0, 0, 1, 1], [], []>} : vector<64x448xf32>, vector<448x128xf32>, vector<64x128xf32> -> vector<64x128xf32>
    %45 = vector.broadcast %2 : vector<64x1xf32> to vector<64x128xf32>
    %46 = arith.addf %44, %45 : vector<64x128xf32>
    %cst_5 = arith.constant 0.000000e+00 : f32
    %47 = vector.broadcast %cst_5 : f32 to vector<64x128xf32>
    %48 = arith.maximumf %46, %47 : vector<64x128xf32>
    %c0_6 = arith.constant 0 : index
    %c0_7 = arith.constant 0 : index
    %49 = vector.load %arg3[%c0_6, %c0_7] : memref<32x64xf32, #tpu.memory_space<vmem>>, vector<32x64xf32>
    %cst_8 = arith.constant dense<0.000000e+00> : vector<32x128xf32>
    %50 = tpu.matmul %49, %48, %cst_8 {dimension_numbers = #tpu.dot_dimension_numbers<[1], [0], [0], [1], [0, 0, 1, 1], [], []>} : vector<32x64xf32>, vector<64x128xf32>, vector<32x128xf32> -> vector<32x128xf32>
    %51 = vector.broadcast %3 : vector<32x1xf32> to vector<32x128xf32>
    %52 = arith.addf %50, %51 : vector<32x128xf32>
    %cst_9 = arith.constant 0.000000e+00 : f32
    %53 = vector.broadcast %cst_9 : f32 to vector<32x128xf32>
    %54 = arith.maximumf %52, %53 : vector<32x128xf32>
    %55 = vector.broadcast %4 : vector<32x1xf32> to vector<32x128xf32>
    %56 = arith.mulf %54, %55 : vector<32x128xf32>
    %cst_10 = arith.constant dense<0.000000e+00> : vector<128xf32>
    %57 = vector.multi_reduction <add>, %56, %cst_10 [0] : vector<32x128xf32> to vector<128xf32>
    %58 = vector.shape_cast %57 : vector<128xf32> to vector<1x128xf32>
    %59 = vector.broadcast %5 : vector<1x1xf32> to vector<1x128xf32>
    %60 = arith.addf %58, %59 : vector<1x128xf32>
    %61 = vector.shape_cast %60 : vector<1x128xf32> to vector<1x128xf32>
    %62 = vector.broadcast %61 : vector<1x128xf32> to vector<8x128xf32>
    %c0_11 = arith.constant 0 : index
    %c0_12 = arith.constant 0 : index
    %63 = vector.load %arg5[%c0_11, %c0_12] : memref<8x128xf32, #tpu.memory_space<vmem>>, vector<8x128xf32>
    tpu.vector_store %arg5[%c0_11, %c0_12], %62 {strides = array<i32>} : memref<8x128xf32, #tpu.memory_space<vmem>>, vector<8x128xf32>,
    return
  }
  func.func @transform_0(%arg0: i32) -> (i32, i32) {
    %c0_i32 = arith.constant 0 : i32
    %c0_i32_0 = arith.constant 0 : i32
    return %c0_i32, %arg0 : i32, i32
  }
  func.func @transform_1(%arg0: i32) -> (i32, i32) {
    %c0_i32 = arith.constant 0 : i32
    %c0_i32_0 = arith.constant 0 : i32
    %c0_i32_1 = arith.constant 0 : i32
    return %c0_i32, %c0_i32_0 : i32, i32
  }
  func.func @transform_2(%arg0: i32) -> (i32, i32) {
    %c0_i32 = arith.constant 0 : i32
    %c0_i32_0 = arith.constant 0 : i32
    %c0_i32_1 = arith.constant 0 : i32
    return %c0_i32, %c0_i32_0 : i32, i32
  }
  func.func @transform_3(%arg0: i32) -> (i32, i32) {
    %c0_i32 = arith.constant 0 : i32
    %c0_i32_0 = arith.constant 0 : i32
    %c0_i32_1 = arith.constant 0 : i32
    return %c0_i32, %c0_i32_0 : i32, i32
  }
  func.func @transform_4(%arg0: i32) -> (i32, i32) {
    %c0_i32 = arith.constant 0 : i32
    %c0_i32_0 = arith.constant 0 : i32
    return %c0_i32, %arg0 : i32, i32
  }
}

</mosaic_0001>

<bundles_post_ra>
// kernel: tpu_custom_call.1
= control target key start
LH: loop header
LB: loop body
LE: loop exit
PB: predicated region body
PF: predicated region fallthrough
CT: control target
= control target key end

     0   :  { %9 = vsyncpa [#allocation3], 0  ;;  %s1429_s0 = inlined_call_operand.vmem [shape: s32[8,128], index: 0, kind: input, shape index: {}]   ;;  %s1430_s1 = inlined_call_operand.hbm [shape: f32[64,448], index: 1, kind: input, shape index: {}]   ;;  %s1431_s2 = inlined_call_operand.vmem [shape: f32[32,64], index: 2, kind: input, shape index: {}]   ;;  %s1432_s3 = inlined_call_operand.vmem [shape: f32[64,8], index: 3, kind: input, shape index: {}]   ;;  %s1433_s4 = inlined_call_operand.hbm [shape: f32[8,128], index: 4, kind: output, shape index: {}]  }
   0x1   :  { %10 = vsyncpa [#allocation4], 0  ;;  %s1099_s15 = smov [#allocation2]   ;;  %s1051_s19 = scalar_lea.hbm %s1430_s1, 4096 }
   0x2   :  { %s18_s16 = sshll.u32 %s1099_s15, 4  ;;  %p1052_p0 = scmp.ne.s32.totalorder %s1430_s1, %s1051_s19  ;;  %s19_s16 = int_to_ptr.vmem [resolvable:$true] %s18_s16 }
   0x3   :  { %p1055_p1 = scmp.lt.u32.totalorder %s1051_s19, %s1430_s1 }
   0x5   :  { %p1057_p2 = pnand %p1055_p1, %p1052_p0 }
   0x7   :  { %1060 = shalt.err (!%p1057_p2)
}
   0x8   :  { %s1061_s24 = scalar_lea.vmem %s19_s16, 4096  ;;  %p1066_p4 = scmp.lt.s32.totalorder %s19_s16, %s19_s16 }
   0x9   :  { %p1062_p3 = scmp.ne.s32.totalorder %s19_s16, %s1061_s24  ;;  %p1067_p5 = scmp.lt.s32.totalorder %s1061_s24, %s1061_s24 }
   0xb   :  { %p1068_p6 = por %p1067_p5, %p1066_p4 }
   0xd   :  { %p1069_p7 = pnand %p1068_p6, %p1062_p3 }
   0xf   :  { %1072 = shalt.err (!%p1069_p7)
}
  0x10   :  { %s1100_s25 = smov 512   ;;  %s1101_s26 = smov 32  }
  0x11   :  { %24 = dma.hbm_to_vmem [thread:$0]  %s1430_s1, 4096, %s19_s16, [#allocation3], %s1100_s25, %s1100_s25, %s1101_s26  }
  0x12   :  { %1095 = dma.done.wait [#allocation3], 4096  }
  0x13   :  { %1096 = vsyncadd [#allocation3], 4294963200  ;;  %v41_v0 = vlaneseq  ;;  %v1102_v1 = vmov 0.0|0.0   ;;  %v1103_v3 = vmov 0   ;;  %v1158_v8 = vld [vmem:[%s1429_s0] sm:$0xff]  ;;  %v247_v11 = vld [vmem:[#allocation2 + $0x8] sm:$0xff] }
  0x14   :  { %982 = vmatprep.subr.bf16.mxu1 %v1102_v1  ;;  %1044 = vset.pattern.permute.xlu0 %v1103_v3  ;;  %vm318_vm0 = vcmask 523264   ;;  %v249_v17 = vld [vmem:[#allocation2 + $0x18] sm:$0xff]  ;;  %v1104_v18 = vmov 1.0|1.0   ;;  %v1264_v27 = vld [vmem:[%s1432_s3] sm:$0xff]  ;;  %v1271_v28 = vld [vmem:[%s1432_s3 + $0x10] sm:$0xff] }
  0x15   :  { %v1147_v2 = vshrl.u32 %v41_v0, 7  ;;  %1045 = vset.pattern.permute.xlu1 %v1103_v3  ;;  %407 = vmatprep.mubr.f32.mxu0 %v247_v11  ;;  %v1292_v29 = vld [vmem:[%s1432_s3 + $0x8] sm:$0xff]  ;;  %v1297_v30 = vld [vmem:[%s1432_s3 + $0x18] sm:$0xff]  ;;  %v37_v31 = vld [vmem:[%s1432_s3 + $0x20] sm:$0xff] }
  0x16   :  { %848 = vmatprep.mubr.msk.f32.mxu1 %vm318_vm0, %v249_v17  ;;  %280 = vperm.xlu0 %1044, %v1264_v27   ;;  %v38_v32 = vld [vmem:[%s1432_s3 + $0x28] sm:$0xff]  ;;  %v39_v34 = vld [vmem:[%s1432_s3 + $0x30] sm:$0xff]  ;;  %v40_v35 = vld [vmem:[%s1432_s3 + $0x38] sm:$0xff] }
  0x17   :  { %v108_v4 = vsub.s32 2, %v1147_v2  ;;  %v164_v5 = vsub.s32 4, %v1147_v2  ;;  %v52_v6 = vsub.s32 0, %v1147_v2  ;;  %v1153_v7 = vadd.s32 8, %v1147_v2  ;;  %290 = vperm.xlu1 %1045, %v1271_v28   ;;  %v246_v37 = vld [vmem:[#allocation2] sm:$0xff]  ;;  %v251_v38 = vld [vmem:[#allocation2 + $0x28] sm:$0xff] }
  0x18   :  { %v1161_v9 = vadd.s32 16, %v1147_v2  ;;  %v1164_v10 = vadd.s32 24, %v1147_v2  ;;  %v1176_v15 = vadd.s32 32, %v1147_v2  ;;  %v1179_v16 = vadd.s32 40, %v1147_v2  ;;  %v250_v39 = vld [vmem:[#allocation2 + $0x20] sm:$0xff]  ;;  %v255_v40 = vld [vmem:[#allocation2 + $0x48] sm:$0xff] }
  0x19   :  { %v109_v12 = vrot.slane %v1158_v8, %v108_v4  ;;  %v1168_v13 = vrot.slane %v1158_v8, %v164_v5  ;;  %v1173_v14 = vrot.slane %v1158_v8, %v52_v6  ;;  %v1200_v19 = vadd.s32 48, %v1147_v2  ;;  %v254_v41 = vld [vmem:[#allocation2 + $0x40] sm:$0xff]  ;;  %v259_v42 = vld [vmem:[#allocation2 + $0x68] sm:$0xff]  ;;  %v248_v45 = vld [vmem:[#allocation2 + $0x10] sm:$0xff] }
  0x1a   :  { %v1208_v20 = vadd.s32 56, %v1147_v2  ;;  %v136_v21 = vsub.s32 3, %v1147_v2  ;;  %v192_v22 = vsub.s32 5, %v1147_v2  ;;  %v80_v23 = vsub.s32 1, %v1147_v2  ;;  %285 = vperm.xlu0 %1044, %v1292_v29   ;;  %v258_v43 = vld [vmem:[#allocation2 + $0x60] sm:$0xff]  ;;  %v263_v44 = vld [vmem:[#allocation2 + $0x88] sm:$0xff] }
  0x1b   :  { %vm110_vm1 = vcmp.eq.s32.totalorder %v1147_v2, %v109_v12  ;;  %vm111_vm2 = vcmp.eq.s32.totalorder %v1153_v7, %v109_v12  ;;  %vm166_vm3 = vcmp.eq.s32.totalorder %v1147_v2, %v1168_v13  ;;  %vm167_vm4 = vcmp.eq.s32.totalorder %v1153_v7, %v1168_v13  ;;  %295 = vperm.xlu1 %1045, %v1297_v30   ;;  %v262_v46 = vld [vmem:[#allocation2 + $0x80] sm:$0xff]  ;;  %v253_v47 = vld [vmem:[#allocation2 + $0x38] sm:$0xff]  ;;  %v267_v48 = vld [vmem:[#allocation2 + $0xa8] sm:$0xff] }
  0x1c   :  { %vm950_vm5 = vmpackc.low %vm111_vm2, %vm110_vm1  ;;  %vm54_vm6 = vcmp.eq.s32.totalorder %v1147_v2, %v1173_v14  ;;  %vm55_vm7 = vcmp.eq.s32.totalorder %v1153_v7, %v1173_v14  ;;  %vm112_vm8 = vcmp.eq.s32.totalorder %v1161_v9, %v109_v12  ;;  %vm113_vm9 = vcmp.eq.s32.totalorder %v1164_v10, %v109_v12  ;;  %v252_v49 = vld [vmem:[#allocation2 + $0x30] sm:$0xff]  ;;  %v266_v50 = vld [vmem:[#allocation2 + $0xa0] sm:$0xff] }
  0x1d   :  { %951 = vmatprep.subr.msk.bf16.mxu0 %vm950_vm5, %v1104_v18  ;;  %vm983_vm10 = vmpackc.low %vm167_vm4, %vm166_vm3  ;;  %vm168_vm11 = vcmp.eq.s32.totalorder %v1161_v9, %v1168_v13  ;;  %vm169_vm12 = vcmp.eq.s32.totalorder %v1164_v10, %v1168_v13  ;;  %vm56_vm14 = vcmp.eq.s32.totalorder %v1161_v9, %v1173_v14  ;;  %vm57_vm15 = vcmp.eq.s32.totalorder %v1164_v10, %v1173_v14  ;;  %v257_v51 = vld [vmem:[#allocation2 + $0x58] sm:$0xff]  ;;  %v271_v52 = vld [vmem:[#allocation2 + $0xc8] sm:$0xff] }
  0x1e   :  { %984 = vmatpush1.bf16.msk.msra.mxu1 %vm983_vm10, %v1104_v18  ;;  %vm952_vm13 = vmpackc.low %vm55_vm7, %vm54_vm6  ;;  %vm114_vm2 = vcmp.eq.s32.totalorder %v1176_v15, %v109_v12  ;;  %vm115_vm3 = vcmp.eq.s32.totalorder %v1179_v16, %v109_v12  ;;  %vm170_vm5 = vcmp.eq.s32.totalorder %v1176_v15, %v1168_v13  ;;  %vm171_vm6 = vcmp.eq.s32.totalorder %v1179_v16, %v1168_v13  ;;  %v256_v53 = vld [vmem:[#allocation2 + $0x50] sm:$0xff]  ;;  %v270_v54 = vld [vmem:[#allocation2 + $0xc0] sm:$0xff] }
  0x1f   :  { %953 = vmatpush3.bf16.msk.msra.mxu0 %vm952_vm13, %v1104_v18  ;;  %985 = vmatprep.subr.bf16.mxu1 %v1102_v1  ;;  %vm954_vm1 = vmpackc.low %vm113_vm9, %vm112_vm8  ;;  %vm58_vm8 = vcmp.eq.s32.totalorder %v1176_v15, %v1173_v14  ;;  %vm59_vm9 = vcmp.eq.s32.totalorder %v1179_v16, %v1173_v14  ;;  %v1237_v24 = vrot.slane %v1158_v8, %v136_v21  ;;  %v220_v33 = vsub.s32 6, %v1147_v2  ;;  %v261_v55 = vld [vmem:[#allocation2 + $0x78] sm:$0xff]  ;;  %v275_v56 = vld [vmem:[#allocation2 + $0xe8] sm:$0xff] }
  0x20   :  { %955 = vmatprep.subr.msk.bf16.mxu0 %vm954_vm1, %v1104_v18  ;;  %vm986_vm4 = vmpackc.low %vm169_vm12, %vm168_vm11  ;;  %vm116_vm11 = vcmp.eq.s32.totalorder %v1200_v19, %v109_v12  ;;  %vm117_vm12 = vcmp.eq.s32.totalorder %v1208_v20, %v109_v12  ;;  %vm173_vm1 = vcmp.eq.s32.totalorder %v1208_v20, %v1168_v13  ;;  %v1247_v25 = vrot.slane %v1158_v8, %v192_v22  ;;  %v260_v57 = vld [vmem:[#allocation2 + $0x70] sm:$0xff]  ;;  %v274_v58 = vld [vmem:[#allocation2 + $0xe0] sm:$0xff] }
  0x21   :  { %vm956_vm7 = vmpackc.low %vm57_vm15, %vm56_vm14  ;;  %vm172_vm15 = vcmp.eq.s32.totalorder %v1200_v19, %v1168_v13  ;;  %v1254_v26 = vrot.slane %v1158_v8, %v80_v23  ;;  %300 = vperm.xlu0 %1044, %v37_v31   ;;  %305 = vperm.xlu1 %1045, %v38_v32   ;;  %v221_v36 = vrot.slane %v1158_v8, %v220_v33  ;;  %v265_v59 = vld [vmem:[#allocation2 + $0x98] sm:$0xff]  ;;  %v264_v60 = vld [vmem:[#allocation2 + $0x90] sm:$0xff]  ;;  %v1105_v5 = vmov 1  }
  0x22   :  { %987 = vmatpush1.bf16.msk.msra.mxu1 %vm986_vm4, %v1104_v18  ;;  %vm958_vm10 = vmpackc.low %vm115_vm3, %vm114_vm2  ;;  %vm60_vm3 = vcmp.eq.s32.totalorder %v1200_v19, %v1173_v14  ;;  %vm61_vm4 = vcmp.eq.s32.totalorder %v1208_v20, %v1173_v14  ;;  %v269_v61 = vld [vmem:[#allocation2 + $0xb8] sm:$0xff]  ;;  %v268_v62 = vld [vmem:[#allocation2 + $0xb0] sm:$0xff]  ;;  %v1107_v8 = vmov 3  }
  0x23   :  { %957 = vmatpush3.bf16.msk.msra.mxu0 %vm956_vm7, %v1104_v18  ;;  %988 = vmatprep.subr.bf16.mxu1 %v1102_v1  ;;  %vm989_vm13 = vmpackc.low %vm171_vm6, %vm170_vm5  ;;  %vm138_vm5 = vcmp.eq.s32.totalorder %v1147_v2, %v1237_v24  ;;  %vm139_vm6 = vcmp.eq.s32.totalorder %v1153_v7, %v1237_v24  ;;  %v273_v63 = vld [vmem:[#allocation2 + $0xd8] sm:$0xff]  ;;  %v272_v0 = vld [vmem:[#allocation2 + $0xd0] sm:$0xff] }
  0x24   :  { %959 = vmatprep.subr.msk.bf16.mxu0 %vm958_vm10, %v1104_v18  ;;  %vm960_vm14 = vmpackc.low %vm59_vm9, %vm58_vm8  ;;  %vm194_vm9 = vcmp.eq.s32.totalorder %v1147_v2, %v1247_v25  ;;  %vm195_vm10 = vcmp.eq.s32.totalorder %v1153_v7, %v1247_v25  ;;  %v276_v3 = vld [vmem:[#allocation2 + $0xf0] sm:$0xff]  ;;  %v561_v4 = vld [vmem:[%s1431_s2] sm:$0xff] }
  0x25   :  { %vm962_vm2 = vmpackc.low %vm117_vm12, %vm116_vm11  ;;  %vm82_vm12 = vcmp.eq.s32.totalorder %v1147_v2, %v1254_v26  ;;  %310 = vperm.xlu0 %1044, %v39_v34   ;;  %315 = vperm.xlu1 %1045, %v40_v35  }
  0x26   :  { %990 = vmatpush1.bf16.msk.msra.mxu1 %vm989_vm13, %v1104_v18  ;;  %vm992_vm7 = vmpackc.low %vm173_vm1, %vm172_vm15  ;;  %vm83_vm13 = vcmp.eq.s32.totalorder %v1153_v7, %v1254_v26  ;;  %vm141_vm15 = vcmp.eq.s32.totalorder %v1164_v10, %v1237_v24 }
  0x27   :  { %961 = vmatpush3.bf16.msk.msra.mxu0 %vm960_vm14, %v1104_v18  ;;  %991 = vmatprep.subr.bf16.mxu1 %v1102_v1  ;;  %vm964_vm8 = vmpackc.low %vm61_vm4, %vm60_vm3  ;;  %vm140_vm14 = vcmp.eq.s32.totalorder %v1161_v9, %v1237_v24  ;;  %vm196_vm3 = vcmp.eq.s32.totalorder %v1161_v9, %v1247_v25  ;;  %vm197_vm4 = vcmp.eq.s32.totalorder %v1164_v10, %v1247_v25 }
  0x28   :  { %963 = vmatprep.subr.msk.bf16.mxu0 %vm962_vm2, %v1104_v18  ;;  %vm966_vm11 = vmpackc.low %vm139_vm6, %vm138_vm5  ;;  %vm84_vm6 = vcmp.eq.s32.totalorder %v1161_v9, %v1254_v26 }
  0x29   :  { %vm995_vm1 = vmpackc.low %vm195_vm10, %vm194_vm9  ;;  %vm143_vm9 = vcmp.eq.s32.totalorder %v1179_v16, %v1237_v24  ;;  %1047 = vset.pattern.permute.xlu1 %v1105_v5  ;;  %1046 = vset.pattern.permute.xlu0 %v1105_v5 }
  0x2a   :  { %993 = vmatpush1.bf16.msk.msra.mxu1 %vm992_vm7, %v1104_v18  ;;  %vm968_vm2 = vmpackc.low %vm83_vm13, %vm82_vm12  ;;  %vm85_vm7 = vcmp.eq.s32.totalorder %v1164_v10, %v1254_v26  ;;  %vm198_vm12 = vcmp.eq.s32.totalorder %v1176_v15, %v1247_v25  ;;  %vm199_vm13 = vcmp.eq.s32.totalorder %v1179_v16, %v1247_v25  ;;  %570 = vperm.xlu1 %1047, %v1292_v29  }
  0x2b   :  { %965 = vmatpush3.bf16.msk.msra.mxu0 %vm964_vm8, %v1104_v18  ;;  %994 = vmatprep.subr.bf16.mxu1 %v1102_v1  ;;  %vm970_vm5 = vmpackc.low %vm141_vm15, %vm140_vm14  ;;  %vm142_vm8 = vcmp.eq.s32.totalorder %v1176_v15, %v1237_v24  ;;  %vm86_vm15 = vcmp.eq.s32.totalorder %v1176_v15, %v1254_v26 }
  0x2c   :  { %967 = vmatprep.subr.msk.bf16.mxu0 %vm966_vm11, %v1104_v18  ;;  %vm998_vm10 = vmpackc.low %vm197_vm4, %vm196_vm3  ;;  %vm145_vm3 = vcmp.eq.s32.totalorder %v1208_v20, %v1237_v24  ;;  %566 = vperm.xlu0 %1046, %v1264_v27  }
  0x2d   :  { %vm972_vm11 = vmpackc.low %vm85_vm7, %vm84_vm6  ;;  %vm200_vm6 = vcmp.eq.s32.totalorder %v1200_v19, %v1247_v25  ;;  %vm201_vm7 = vcmp.eq.s32.totalorder %v1208_v20, %v1247_v25 }
  0x2e   :  { %996 = vmatpush1.bf16.msk.msra.mxu1 %vm995_vm1, %v1104_v18  ;;  %vm974_vm14 = vmpackc.low %vm143_vm9, %vm142_vm8  ;;  %vm87_vm1 = vcmp.eq.s32.totalorder %v1179_v16, %v1254_v26  ;;  %vm88_vm9 = vcmp.eq.s32.totalorder %v1200_v19, %v1254_v26  ;;  %574 = vperm.xlu1 %1047, %v1271_v28  }
  0x2f   :  { %969 = vmatpush3.bf16.msk.msra.mxu0 %vm968_vm2, %v1104_v18  ;;  %997 = vmatprep.subr.bf16.mxu1 %v1102_v1  ;;  %vm144_vm2 = vcmp.eq.s32.totalorder %v1200_v19, %v1237_v24  ;;  %vm1001_vm4 = vmpackc.low %vm199_vm13, %vm198_vm12  ;;  %vm222_vm13 = vcmp.eq.s32.totalorder %v1147_v2, %v221_v36 }
  0x30   :  { %971 = vmatprep.subr.msk.bf16.mxu0 %vm970_vm5, %v1104_v18  ;;  %vm976_vm5 = vmpackc.low %vm87_vm1, %vm86_vm15  ;;  %vm224_vm1 = vcmp.eq.s32.totalorder %v1161_v9, %v221_v36  ;;  %578 = vperm.xlu0 %1046, %v1297_v30  }
  0x31   :  { %vm978_vm8 = vmpackc.low %vm145_vm3, %vm144_vm2  ;;  %vm225_vm2 = vcmp.eq.s32.totalorder %v1164_v10, %v221_v36 }
  0x32   :  { %999 = vmatpush1.bf16.msk.msra.mxu1 %vm998_vm10, %v1104_v18  ;;  %vm89_vm10 = vcmp.eq.s32.totalorder %v1208_v20, %v1254_v26  ;;  %vm1010_vm3 = vmpackc.low %vm225_vm2, %vm224_vm1 }
  0x33   :  { %973 = vmatpush3.bf16.msk.msra.mxu0 %vm972_vm11, %v1104_v18  ;;  %1000 = vmatprep.subr.bf16.mxu1 %v1102_v1  ;;  %vm1004_vm11 = vmpackc.low %vm201_vm7, %vm200_vm6  ;;  %vm228_vm7 = vcmp.eq.s32.totalorder %v1200_v19, %v221_v36 }
  0x34   :  { %975 = vmatprep.subr.msk.bf16.mxu0 %vm974_vm14, %v1104_v18  ;;  %vm980_vm12 = vmpackc.low %vm89_vm10, %vm88_vm9  ;;  %vm223_vm14 = vcmp.eq.s32.totalorder %v1153_v7, %v221_v36  ;;  %v1106_v7 = vmov 2  }
  0x35   :  { %vm1007_vm15 = vmpackc.low %vm223_vm14, %vm222_vm13  ;;  %1048 = vset.pattern.permute.xlu1 %v1106_v7  ;;  %1049 = vset.pattern.permute.xlu0 %v1106_v7 }
  0x36   :  { %1002 = vmatpush1.bf16.msk.msra.mxu1 %vm1001_vm4, %v1104_v18  ;;  %vm226_vm4 = vcmp.eq.s32.totalorder %v1176_v15, %v221_v36  ;;  %683 = vperm.xlu1 %1048, %v1264_v27  }
  0x37   :  { %977 = vmatpush3.bf16.msk.msra.mxu0 %vm976_vm5, %v1104_v18  ;;  %1003 = vmatprep.subr.bf16.mxu1 %v1102_v1  ;;  %vm227_vm5 = vcmp.eq.s32.totalorder %v1179_v16, %v221_v36 }
  0x38   :  { %979 = vmatprep.subr.msk.bf16.mxu0 %vm978_vm8, %v1104_v18  ;;  %vm1013_vm6 = vmpackc.low %vm227_vm5, %vm226_vm4  ;;  %vm229_vm8 = vcmp.eq.s32.totalorder %v1208_v20, %v221_v36  ;;  %687 = vperm.xlu0 %1049, %v1292_v29  }
  0x39   :  { %vm1016_vm9 = vmpackc.low %vm229_vm8, %vm228_vm7 }
  0x3a   :  { %1005 = vmatpush1.bf16.msk.msra.mxu1 %vm1004_vm11, %v1104_v18  ;;  %691 = vperm.xlu1 %1048, %v1271_v28  }
  0x3b   :  { %981 = vmatpush3.bf16.msk.msra.mxu0 %vm980_vm12, %v1104_v18  ;;  %1006 = vmatprep.subr.bf16.mxu1 %v1102_v1 }
  0x3c   :  { %1050 = vset.pattern.permute.xlu0 %v1107_v8 }
  0x3d   :  { %712 = vperm.xlu0 %1050, %v1264_v27  }
  0x3e   :  { %408 = vmatmul.mubr.f32.vlgmr.msra.gmra.mrb[0].mxu0 %v246_v37  ;;  %1008 = vmatpush1.bf16.msk.msra.mxu1 %vm1007_vm15, %v1104_v18 }
  0x3f   :  { %412 = vmatprep.mubr.f32.mxu0 %v251_v38  ;;  %1009 = vmatprep.subr.bf16.mxu1 %v1102_v1 }
  0x40   :  { %695 = vperm.xlu1 %1048, %v1297_v30  }
  0x42   :  { %413 = vmatmul.mubr.f32.gmra.mrb[2].mxu0 %v250_v39  ;;  %1011 = vmatpush1.bf16.msk.msra.mxu1 %vm1010_vm3, %v1104_v18 }
  0x43   :  { %417 = vmatprep.mubr.f32.mxu0 %v255_v40  ;;  %1012 = vmatprep.subr.bf16.mxu1 %v1102_v1 }
  0x46   :  { %418 = vmatmul.mubr.f32.gmra.mrb[4].mxu0 %v254_v41  ;;  %1014 = vmatpush1.bf16.msk.msra.mxu1 %vm1013_vm6, %v1104_v18 }
  0x47   :  { %422 = vmatprep.mubr.f32.mxu0 %v259_v42  ;;  %1015 = vmatprep.subr.bf16.mxu1 %v1102_v1  ;;  %v277_v1 = vld [vmem:[#allocation2 + $0xf8] sm:$0xff] }
  0x4a   :  { %423 = vmatmul.mubr.f32.gmra.mrb[6].mxu0 %v258_v43  ;;  %1017 = vmatpush1.bf16.msk.msra.mxu1 %vm1016_vm9, %v1104_v18 }
  0x4b   :  { %427 = vmatprep.mubr.f32.mxu0 %v263_v44 }
  0x4d   :  { %513 = vmatmul.mubr.f32.vlgmr.msra.gmra.mrb[0].mxu1 %v248_v45 }
  0x4e   :  { %428 = vmatmul.mubr.f32.gmra.mrb[8].mxu0 %v262_v46  ;;  %849 = vmatprep.mubr.msk.f32.mxu1 %vm318_vm0, %v253_v47 }
  0x4f   :  { %432 = vmatprep.mubr.f32.mxu0 %v267_v48 }
  0x51   :  { %518 = vmatmul.mubr.f32.gmra.mrb[2].mxu1 %v252_v49 }
  0x52   :  { %433 = vmatmul.mubr.f32.gmra.mrb[10].mxu0 %v266_v50  ;;  %850 = vmatprep.mubr.msk.f32.mxu1 %vm318_vm0, %v257_v51 }
  0x53   :  { %437 = vmatprep.mubr.f32.mxu0 %v271_v52 }
  0x55   :  { %523 = vmatmul.mubr.f32.gmra.mrb[4].mxu1 %v256_v53 }
  0x56   :  { %438 = vmatmul.mubr.f32.gmra.mrb[12].mxu0 %v270_v54  ;;  %851 = vmatprep.mubr.msk.f32.mxu1 %vm318_vm0, %v261_v55 }
  0x57   :  { %442 = vmatprep.mubr.f32.mxu0 %v275_v56 }
  0x59   :  { %528 = vmatmul.mubr.f32.gmra.mrb[6].mxu1 %v260_v57 }
  0x5a   :  { %443 = vmatmul.mubr.f32.gmra.mrb[14].mxu0 %v274_v58  ;;  %852 = vmatprep.mubr.msk.f32.mxu1 %vm318_vm0, %v265_v59 }
  0x5b   :  { %944 = vmatprep.mubr.msk.f32.mxu0 %vm318_vm0, %v561_v4 }
  0x5d   :  { %533 = vmatmul.mubr.f32.gmra.mrb[8].mxu1 %v264_v60 }
  0x5e   :  { %853 = vmatprep.mubr.msk.f32.mxu1 %vm318_vm0, %v269_v61 }
  0x61   :  { %538 = vmatmul.mubr.f32.gmra.mrb[10].mxu1 %v268_v62 }
  0x62   :  { %854 = vmatprep.mubr.msk.f32.mxu1 %vm318_vm0, %v273_v63 }
  0x65   :  { %543 = vmatmul.mubr.f32.gmra.mrb[12].mxu1 %v272_v0 }
  0x66   :  { %855 = vmatprep.mubr.msk.f32.mxu1 %vm318_vm0, %v277_v1 }
  0x69   :  { %548 = vmatmul.mubr.f32.gmra.mrb[14].mxu1 %v276_v3 }
  0x95   :  { %v281_v15 = vpop.permute.xlu0 %280 }
  0x96   :  { %v291_v29 = vpop.permute.xlu1 %290 }
  0x99   :  { %v286_v21 = vpop.permute.xlu0 %285 }
  0x9a   :  { %v296_v41 = vpop.permute.xlu1 %295 }
  0xa0   :  { %v301_v54 = vpop.permute.xlu0 %300  ;;  %v306_v0 = vpop.permute.xlu1 %305 }
  0xa4   :  { %v311_v7 = vpop.permute.xlu0 %310 }
 0x111   :  { %v892_v9 = vpop.f32.mrb[0].mxu0 }
 0x112   :  { %v893_v10 = vpop.f32.mrb[1].mxu0 }
 0x113   :  { %v894_v11 = vadd.f32 %v893_v10, %v892_v9 }
 0x115   :  { %v895_v12 = vpop.f32.mrb[2].mxu0  ;;  %v410_v20 = vadd.f32 %v894_v11, %v281_v15  ;;  %v316_v15 = vpop.permute.xlu1 %315 }
 0x116   :  { %v896_v13 = vpop.f32.mrb[3].mxu0 }
 0x117   :  { %v897_v14 = vadd.f32 %v896_v13, %v895_v12 }
 0x119   :  { %v898_v16 = vpop.f32.mrb[4].mxu0  ;;  %v415_v28 = vadd.f32 %v897_v14, %v286_v21 }
 0x11a   :  { %v899_v17 = vpop.f32.mrb[5].mxu0 }
 0x11b   :  { %v900_v18 = vadd.f32 %v899_v17, %v898_v16 }
 0x11d   :  { %v901_v19 = vpop.f32.mrb[6].mxu0  ;;  %v420_v36 = vadd.f32 %v900_v18, %v291_v29 }
 0x11e   :  { %v902_v22 = vpop.f32.mrb[7].mxu0 }
 0x11f   :  { %v903_v23 = vadd.f32 %v902_v22, %v901_v19 }
 0x120   :  { %v514_v24 = vpop.f32.mrb[0].mxu1 }
 0x121   :  { %v515_v25 = vadd.f32 %v514_v24, %v410_v20  ;;  %v904_v26 = vpop.f32.mrb[8].mxu0  ;;  %v516_v27 = vpop.f32.mrb[1].mxu1  ;;  %v425_v47 = vadd.f32 %v903_v23, %v296_v41  ;;  %v562_v23 = vld [vmem:[%s1431_s2 + $0x8] sm:$0xff]  ;;  %v563_v24 = vld [vmem:[%s1431_s2 + $0x10] sm:$0xff] }
 0x122   :  { %v905_v30 = vpop.f32.mrb[9].mxu0  ;;  %v567_v27 = vpop.permute.xlu0 %566 }
 0x123   :  { %v906_v31 = vadd.f32 %v905_v30, %v904_v26  ;;  %v553_v38 = vmax.f32 %v515_v25, 0.0  ;;  %v564_v25 = vld [vmem:[%s1431_s2 + $0x18] sm:$0xff]  ;;  %v571_v26 = vpop.permute.xlu1 %570  ;;  %s1108_s2 = smov [#allocation5]  }
 0x124   :  { %v519_v32 = vpop.f32.mrb[2].mxu1  ;;  %s727_s26 = sshll.u32 %s1108_s2, 4  ;;  %s728_s26 = int_to_ptr.vmem [resolvable:$true] %s727_s26 }
 0x125   :  { %v520_v33 = vadd.f32 %v519_v32, %v415_v28  ;;  %v907_v34 = vpop.f32.mrb[10].mxu0  ;;  %v521_v35 = vpop.f32.mrb[3].mxu1  ;;  %v430_v59 = vadd.f32 %v906_v31, %v301_v54  ;;  %s1073_s27 = scalar_lea.vmem %s728_s26, 128  ;;  %p1078_p9 = scmp.lt.s32.totalorder %s728_s26, %s728_s26 }
 0x126   :  { %v908_v37 = vpop.f32.mrb[11].mxu0  ;;  %v579_v29 = vpop.permute.xlu0 %578  ;;  %p1074_p8 = scmp.ne.s32.totalorder %s728_s26, %s1073_s27  ;;  %p1079_p10 = scmp.lt.s32.totalorder %s1073_s27, %s1073_s27 }
 0x127   :  { %v554_v39 = vmax.f32 %v520_v33, 0.0  ;;  %v909_v40 = vadd.f32 %v908_v37, %v907_v34  ;;  %v575_v28 = vpop.permute.xlu1 %574 }
 0x128   :  { %v524_v42 = vpop.f32.mrb[4].mxu1  ;;  %p1080_p11 = por %p1079_p10, %p1078_p9 }
 0x129   :  { %v1018_v43 = vpack.c.bf16 %v554_v39, %v553_v38  ;;  %v525_v44 = vadd.f32 %v524_v42, %v420_v36  ;;  %v910_v45 = vpop.f32.mrb[12].mxu0  ;;  %v526_v46 = vpop.f32.mrb[5].mxu1  ;;  %v435_v1 = vadd.f32 %v909_v40, %v306_v0 }
 0x12a   :  { %v911_v48 = vpop.f32.mrb[13].mxu0  ;;  %v688_v35 = vpop.permute.xlu0 %687  ;;  %p1081_p12 = pnand %p1080_p11, %p1074_p8 }
 0x12b   :  { %v912_v49 = vadd.f32 %v911_v48, %v910_v45  ;;  %1019 = vmatprep.subr.bf16.mxu0 %v1018_v43  ;;  %v555_v56 = vmax.f32 %v525_v44, 0.0  ;;  %v684_v30 = vpop.permute.xlu1 %683 }
 0x12c   :  { %v529_v50 = vpop.f32.mrb[6].mxu1  ;;  %1021 = vmatpush3.bf16.msra.mxu0 %v1018_v43 }
 0x12d   :  { %v530_v51 = vadd.f32 %v529_v50, %v425_v47  ;;  %v913_v52 = vpop.f32.mrb[14].mxu0  ;;  %v531_v53 = vpop.f32.mrb[7].mxu1  ;;  %v440_v10 = vadd.f32 %v912_v49, %v311_v7 }
 0x12e   :  { %v914_v55 = vpop.f32.mrb[15].mxu0 }
 0x12f   :  { %v556_v57 = vmax.f32 %v530_v51, 0.0  ;;  %v915_v58 = vadd.f32 %v914_v55, %v913_v52  ;;  %v692_v39 = vpop.permute.xlu1 %691 }
 0x130   :  { %v534_v60 = vpop.f32.mrb[8].mxu1 }
 0x131   :  { %v1022_v61 = vpack.c.bf16 %v556_v57, %v555_v56  ;;  %v535_v62 = vadd.f32 %v534_v60, %v430_v59  ;;  %v536_v63 = vpop.f32.mrb[9].mxu1  ;;  %v445_v16 = vadd.f32 %v915_v58, %v316_v15  ;;  %v713_v58 = vpop.permute.xlu0 %712 }
 0x133   :  { %1023 = vmatprep.subr.bf16.mxu0 %v1022_v61  ;;  %v557_v8 = vmax.f32 %v535_v62, 0.0  ;;  %v696_v49 = vpop.permute.xlu1 %695 }
 0x134   :  { %v539_v3 = vpop.f32.mrb[10].mxu1  ;;  %1025 = vmatpush3.bf16.msra.mxu0 %v1022_v61 }
 0x135   :  { %v540_v4 = vadd.f32 %v539_v3, %v435_v1  ;;  %v541_v5 = vpop.f32.mrb[11].mxu1 }
 0x137   :  { %v558_v9 = vmax.f32 %v540_v4, 0.0 }
 0x138   :  { %v544_v11 = vpop.f32.mrb[12].mxu1 }
 0x139   :  { %v1026_v12 = vpack.c.bf16 %v558_v9, %v557_v8  ;;  %v545_v13 = vadd.f32 %v544_v11, %v440_v10  ;;  %v546_v14 = vpop.f32.mrb[13].mxu1 }
 0x13b   :  { %1027 = vmatprep.subr.bf16.mxu0 %v1026_v12  ;;  %v559_v20 = vmax.f32 %v545_v13, 0.0 }
 0x13c   :  { %v549_v17 = vpop.f32.mrb[14].mxu1  ;;  %1029 = vmatpush3.bf16.msra.mxu0 %v1026_v12 }
 0x13d   :  { %v550_v18 = vadd.f32 %v549_v17, %v445_v16  ;;  %v551_v19 = vpop.f32.mrb[15].mxu1 }
 0x13f   :  { %v560_v21 = vmax.f32 %v550_v18, 0.0 }
 0x141   :  { %v1030_v22 = vpack.c.bf16 %v560_v21, %v559_v20 }
 0x143   :  { %1031 = vmatprep.subr.bf16.mxu0 %v1030_v22 }
 0x144   :  { %1033 = vmatpush3.bf16.msra.mxu0 %v1030_v22 }
 0x147   :  { %945 = vmatmul.mubr.msk.f32.vlgmr.msra.gmra.mrb[16].mxu0 %vm318_vm0, %v562_v23 }
 0x148   :  { %947 = vmatprep.mubr.msk.f32.mxu0 %vm318_vm0, %v563_v24 }
 0x14b   :  { %948 = vmatmul.mubr.msk.f32.gmra.mrb[18].mxu0 %vm318_vm0, %v564_v25 }
 0x21a   :  { %v946_v31 = vpop.f32.mrb[16].mxu0 }
 0x21b   :  { %v665_v32 = vadd.f32 %v946_v31, %v571_v26  ;;  %v659_v33 = vpop.f32.mrb[17].mxu0 }
 0x21c   :  { %v660_v34 = vadd.f32 %v659_v33, %v567_v27 }
 0x21d   :  { %v679_v36 = vmax.f32 %v665_v32, 0.0 }
 0x21e   :  { %v678_v37 = vmax.f32 %v660_v34, 0.0  ;;  %v949_v38 = vpop.f32.mrb[18].mxu0 }
 0x21f   :  { %v699_v40 = vmul.f32 %v688_v35, %v679_v36  ;;  %v675_v41 = vadd.f32 %v949_v38, %v579_v29  ;;  %v669_v42 = vpop.f32.mrb[19].mxu0 }
 0x220   :  { %v698_v43 = vmul.f32 %v684_v30, %v678_v37  ;;  %v670_v44 = vadd.f32 %v669_v42, %v575_v28 }
 0x221   :  { %v681_v46 = vmax.f32 %v675_v41, 0.0 }
 0x222   :  { %v702_v45 = vadd.f32 %v699_v40, %v698_v43  ;;  %v680_v47 = vmax.f32 %v670_v44, 0.0 }
 0x223   :  { %v701_v50 = vmul.f32 %v696_v49, %v681_v46 }
 0x224   :  { %v700_v48 = vmul.f32 %v692_v39, %v680_v47 }
 0x226   :  { %v703_v51 = vadd.f32 %v702_v45, %v700_v48 }
 0x228   :  { %v704_v52 = vadd.f32 %v703_v51, %v701_v50 }
 0x22a   :  { %v705_v53 = vrot.slane %v704_v52, 4 }
 0x22c   :  { %v706_v54 = vadd.f32 %v705_v53, %v704_v52 }
 0x22e   :  { %v707_v55 = vrot.slane %v706_v54, 2 }
 0x230   :  { %v708_v56 = vadd.f32 %v707_v55, %v706_v54 }
 0x232   :  { %v709_v57 = vrot.slane %v708_v56, 1 }
 0x234   :  { %v710_v59 = vadd.f32 %v709_v57, %v708_v56 }
 0x236   :  { %v715_v60 = vadd.f32 %v713_v58, %v710_v59 }
 0x238   :  { %v719_v61 = vrot.slane %v715_v60, %v52_v6 }
 0x23a   :  { %720 = vst [vmem:[#allocation5] sm:$0xff] %v719_v61 }
 0x23b   :  { %1084 = shalt.err (!%p1081_p12)
}
 0x23c   :  { %s1085_s29 = scalar_lea.hbm %s1433_s4, 128 }
 0x23d   :  { %p1086_p13 = scmp.ne.s32.totalorder %s1433_s4, %s1085_s29  ;;  %p1089_p0 = scmp.lt.u32.totalorder %s1085_s29, %s1433_s4 }
 0x23f   :  { %p1091_p1 = pnand %p1089_p0, %p1086_p13 }
 0x241   :  { %1094 = shalt.err (!%p1091_p1)
}
 0x242   :  { %730 = dma.vmem_to_hbm [thread:$0]  %s728_s26, 128, %s1433_s4, [#allocation4]  }
 0x243   :  { %1097 = dma.done.wait [#allocation4], 128  }
 0x244   :  { %1098 = vsyncadd [#allocation4], 4294967168 }
 0x245   :  { %734 = vsyncpa [#allocation3], 1 }
 0x246   :  { %735 = vsyncpa [#allocation4], 1 }

</bundles_post_ra>
